<compile_context>
chip_gen: v7x
topology: tpu7x:2x2x1
jax: 0.10.0
libtpu: 0.0.40
codegen_flags: <defaults>
</compile_context>

<pallas_src>
import jax
import jax.numpy as jnp
from jax.experimental import pallas as pl
from jax.experimental.pallas import tpu as pltpu

_LANE = 128
_MIB = 1024 * 1024
_MAX_TB = 64      # cap batch tile: bounds the padded (tb,1,1) mask VMEM footprint


def _chip_config():
    """(block_bytes, needs_megacore_split) based on the local TPU generation."""
    try:
        kind = jax.devices()[0].device_kind.lower()
    except Exception:
        kind = ""
    if "v7" in kind or "tpu7" in kind:
        return 8 * _MIB, True          # ~3.2 TB/s HBM per TC, 2 TCs per chip
    if "v6" in kind:
        return 4 * _MIB, False
    if "v5" in kind and ("lite" in kind or "v5e" in kind):
        return 2 * _MIB, False         # 16 MiB default scoped VMEM; 2 MiB is enough
    return 4 * _MIB, False


def _sublane(itemsize):
    # Packed sublane granularity: 8 for f32, 16 for bf16/f16, 32 for int8/fp8.
    return max(8, 32 // itemsize)


def _drop_path_kernel(m_ref, x_ref, o_ref):
    # m_ref: (tb,1,1) or (tb,1) per-sample scale in x.dtype.
    # x_ref/o_ref: (tb,tr,128) or (tb,tf) tiles.  Pure VPU broadcast-multiply.
    o_ref[...] = (x_ref[...] * m_ref[...]).astype(o_ref.dtype)


def _pick_tiles_3d(B, R, itemsize, block_bytes, split_mc):
    """Tiles for the lane-dense (B, R, 128) view, targeting ~block_bytes."""
    sub = _sublane(itemsize)
    rows_cap = max(sub, (block_bytes // (_LANE * itemsize)) // sub * sub)
    if R <= rows_cap:
        tr = R
    else:
        # Only accept an exact divisor if it keeps blocks large (>= cap/2);
        # otherwise use the cap and let Pallas mask the partial edge block.
        tr = next((t for t in range(rows_cap, max(sub, rows_cap // 2) - 1, -sub)
                   if R % t == 0), rows_cap)
    tb_cap = max(1, min(_MAX_TB, block_bytes // (tr * _LANE * itemsize)))
    if B <= tb_cap:
        tb = B
    else:
        tb = next((t for t in range(tb_cap, max(1, tb_cap // 2) - 1, -1)
                   if B % t == 0), tb_cap)
    # v7x megacore: ensure >=2 grid steps when the tensor is big enough to care.
    if (split_mc and pl.cdiv(B, tb) * pl.cdiv(R, tr) == 1
            and B * R * _LANE * itemsize > _MIB):
        if R > sub:
            tr = max(sub, pl.cdiv(pl.cdiv(R, 2), sub) * sub)
        elif B > 1:
            tb = pl.cdiv(B, 2)
    return tb, tr


def _pick_tiles_2d(B, F, itemsize, block_bytes, split_mc):
    """Tiles for the ragged (B, F) view (F not a multiple of 128)."""
    sub = _sublane(itemsize)
    # Batch tile must be a multiple of the packed sublane tile or equal to B.
    tb = B if B <= 4 * sub else 4 * sub
    pad_tb = pl.cdiv(tb, sub) * sub                       # VMEM sublane padding
    padded_f = pl.cdiv(F, _LANE) * _LANE
    if pad_tb * padded_f * itemsize <= block_bytes:
        tf = F                                            # single full-extent block
    else:
        tf = max(_LANE, (block_bytes // (pad_tb * itemsize)) // _LANE * _LANE)
    if (split_mc and pl.cdiv(B, tb) * pl.cdiv(F, tf) == 1
            and B * F * itemsize > _MIB):
        if F > _LANE:
            tf = max(_LANE, pl.cdiv(pl.cdiv(F, 2), _LANE) * _LANE)
        elif B > sub:
            tb = max(sub, pl.cdiv(pl.cdiv(B, 2), sub) * sub)
    return tb, tf


def drop_path_pallas(x, drop_prob: float, key, *, training: bool = True,
                     scale_by_keep: bool = True, in_place: bool = False):
    """Matches timm/PyTorch drop_path(x, drop_prob, training, scale_by_keep)."""
    if drop_prob == 0.0 or not training:
        return x

    keep_prob = 1.0 - drop_prob
    B = x.shape[0]

    # Per-sample keep/scale factor, computed exactly like the reference
    # (Bernoulli and 1/keep_prob scaling in x.dtype): keeps the in-kernel
    # multiply in the native dtype (no f32 round trip for bf16 activations)
    # and gives bit-exact parity with the reference.
    mask = jax.random.bernoulli(key, p=keep_prob, shape=(B,)).astype(x.dtype)
    if keep_prob > 0.0 and scale_by_keep:
        mask = mask / jnp.asarray(keep_prob, dtype=x.dtype)

    orig_shape = x.shape
    F = 1
    for d in x.shape[1:]:
        F *= d
    itemsize = x.dtype.itemsize
    block_bytes, split_mc = _chip_config()

    # Scoped-VMEM budget for the double-buffered in+out pipeline.
    vmem_limit = int(min(56 * _MIB, max(32 * _MIB, 4 * block_bytes + 8 * _MIB)))
    cparams = pltpu.CompilerParams(
        dimension_semantics=("parallel", "parallel"),
        vmem_limit_bytes=vmem_limit)
    io_alias = {1: 0} if in_place else {}

    if F % _LANE == 0:
        # Lane-dense (B, R, 128) view (free reshape, no HBM copy).
        R = F // _LANE
        x3 = x.reshape(B, R, _LANE)
        tb, tr = _pick_tiles_3d(B, R, itemsize, block_bytes, split_mc)
        grid = (pl.cdiv(B, tb), pl.cdiv(R, tr))
        out = pl.pallas_call(
            _drop_path_kernel,
            out_shape=jax.ShapeDtypeStruct((B, R, _LANE), x.dtype),
            grid=grid,
            in_specs=[
                pl.BlockSpec((tb, 1, 1), lambda b, r: (b, 0, 0)),        # scale
                pl.BlockSpec((tb, tr, _LANE), lambda b, r: (b, r, 0)),   # x tile
            ],
            out_specs=pl.BlockSpec((tb, tr, _LANE), lambda b, r: (b, r, 0)),
            compiler_params=cparams,
            input_output_aliases=io_alias,
        )(mask.reshape(B, 1, 1), x3)
        return out.reshape(orig_shape)

    # Ragged feature count: operate directly on the (B, F) view and let Pallas
    # mask the partial edge block (no jnp.pad / slice HBM round trip).
    x2 = x.reshape(B, F)
    tb, tf = _pick_tiles_2d(B, F, itemsize, block_bytes, split_mc)
    grid = (pl.cdiv(B, tb), pl.cdiv(F, tf))
    out = pl.pallas_call(
        _drop_path_kernel,
        out_shape=jax.ShapeDtypeStruct((B, F), x.dtype),
        grid=grid,
        in_specs=[
            pl.BlockSpec((tb, 1), lambda b, f: (b, 0)),
            pl.BlockSpec((tb, tf), lambda b, f: (b, f)),
        ],
        out_specs=pl.BlockSpec((tb, tf), lambda b, f: (b, f)),
        compiler_params=cparams,
        input_output_aliases=io_alias,
    )(mask.reshape(B, 1), x2)
    return out.reshape(orig_shape)


def drop_path_reference(x, drop_prob, key, training=True, scale_by_keep=True):
    """Pure-JAX reference mirroring the PyTorch semantics (same RNG draws)."""
    if drop_prob == 0.0 or not training:
        return x
    keep_prob = 1.0 - drop_prob
    B = x.shape[0]
    mask = jax.random.bernoulli(key, p=keep_prob, shape=(B,)).astype(x.dtype)
    if keep_prob > 0.0 and scale_by_keep:
        mask = mask / jnp.asarray(keep_prob, dtype=x.dtype)
    return x * mask.reshape((B,) + (1,) * (x.ndim - 1))


if __name__ == "__main__":
    root = jax.random.PRNGKey(0)
    k_x, k_mask, k_x2, k_m2, k_x3, k_m3 = jax.random.split(root, 6)

    # 1) Small NCHW input consistent with ViT / CNN usage of DropPath (B=2).
    x = jax.random.normal(k_x, (2, 4, 16, 16), dtype=jnp.float32)
    y = drop_path_pallas(x, 0.2, k_mask, training=True, scale_by_keep=True)
    y = jax.block_until_ready(y)
    y_ref = drop_path_reference(x, 0.2, k_mask, training=True, scale_by_keep=True)
    assert y.shape == x.shape and y.dtype == x.dtype
    assert jnp.allclose(y, y_ref, atol=1e-6, rtol=1e-6)

    # 2) Larger batch exercising the batch-tiled path (B=8).
    x2 = jax.random.normal(k_x2, (8, 4, 8, 8), dtype=jnp.float32)
    y2 = jax.block_until_ready(
        drop_path_pallas(x2, 0.25, k_m2, training=True, scale_by_keep=True))
    y2_ref = drop_path_reference(x2, 0.25, k_m2, training=True, scale_by_keep=True)
    assert jnp.allclose(y2, y2_ref, atol=1e-6, rtol=1e-6)

    # 3) Ragged feature size (C*H*W not a multiple of 128) — no pad/slice,
    #    the kernel runs directly on the (B, F) view.
    x3 = jax.random.normal(k_x3, (2, 3, 5, 7), dtype=jnp.float32)
    y3 = jax.block_until_ready(
        drop_path_pallas(x3, 0.5, k_m3, training=True, scale_by_keep=True))
    y3_ref = drop_path_reference(x3, 0.5, k_m3, training=True, scale_by_keep=True)
    assert jnp.allclose(y3, y3_ref, atol=1e-6, rtol=1e-6)

    # 4) Eval / drop_prob=0 path is the identity.
    assert jnp.array_equal(drop_path_pallas(x, 0.2, k_mask, training=False), x)
    assert jnp.array_equal(drop_path_pallas(x, 0.0, k_mask, training=True), x)

    print("KERNEL_OK")
</pallas_src>

<mosaic_0001>
module attributes {stable_mosaic.version = 11 : i64} {
  func.func @_drop_path_kernel(%arg0: i32, %arg1: i32, %arg2: memref<2x1x1xf32, #tpu.memory_space<vmem>>, %arg3: memref<2x8x128xf32, #tpu.memory_space<vmem>>, %arg4: memref<2x8x128xf32, #tpu.memory_space<vmem>>) attributes {dimension_semantics = [#tpu.dimension_semantics<parallel>, #tpu.dimension_semantics<parallel>], iteration_bounds = array<i64: 1, 1>, scalar_prefetch = 0 : i64, scratch_operands = 0 : i64, tpu.core_type = #tpu.core_type<tc>, window_params = [{transform_indices = @transform_0, window_bounds = array<i64: 2, 1, 1>}, {transform_indices = @transform_1, window_bounds = array<i64: 2, 8, 128>}, {transform_indices = @transform_2, window_bounds = array<i64: 2, 8, 128>}]} {
    %c0 = arith.constant 0 : index
    %c0_0 = arith.constant 0 : index
    %c0_1 = arith.constant 0 : index
    %0 = vector.load %arg3[%c0, %c0_0, %c0_1] : memref<2x8x128xf32, #tpu.memory_space<vmem>>, vector<2x8x128xf32>
    %c0_2 = arith.constant 0 : index
    %c0_3 = arith.constant 0 : index
    %c0_4 = arith.constant 0 : index
    %1 = vector.load %arg2[%c0_2, %c0_3, %c0_4] : memref<2x1x1xf32, #tpu.memory_space<vmem>>, vector<2x1x1xf32>
    %2 = vector.broadcast %1 : vector<2x1x1xf32> to vector<2x8x128xf32>
    %3 = arith.mulf %0, %2 : vector<2x8x128xf32>
    %c0_5 = arith.constant 0 : index
    %c0_6 = arith.constant 0 : index
    %c0_7 = arith.constant 0 : index
    %4 = vector.load %arg4[%c0_5, %c0_6, %c0_7] : memref<2x8x128xf32, #tpu.memory_space<vmem>>, vector<2x8x128xf32>
    tpu.vector_store %arg4[%c0_5, %c0_6, %c0_7], %3 {strides = array<i32>} : memref<2x8x128xf32, #tpu.memory_space<vmem>>, vector<2x8x128xf32>,
    return
  }
  func.func @transform_0(%arg0: i32, %arg1: i32) -> (i32, i32, i32) {
    %c0_i32 = arith.constant 0 : i32
    %c0_i32_0 = arith.constant 0 : i32
    %c0_i32_1 = arith.constant 0 : i32
    return %arg0, %c0_i32, %c0_i32_0 : i32, i32, i32
  }
  func.func @transform_1(%arg0: i32, %arg1: i32) -> (i32, i32, i32) {
    %c0_i32 = arith.constant 0 : i32
    %c0_i32_0 = arith.constant 0 : i32
    return %arg0, %arg1, %c0_i32 : i32, i32, i32
  }
  func.func @transform_2(%arg0: i32, %arg1: i32) -> (i32, i32, i32) {
    %c0_i32 = arith.constant 0 : i32
    %c0_i32_0 = arith.constant 0 : i32
    return %arg0, %arg1, %c0_i32 : i32, i32, i32
  }
}

</mosaic_0001>

<bundles_post_ra>
// kernel: tpu_custom_call.1
= control target key start
LH: loop header
LB: loop body
LE: loop exit
PB: predicated region body
PF: predicated region fallthrough
CT: control target
= control target key end

     0   :  { %7 = vsyncpa [#allocation3], 0  ;;  %s181_s0 = inlined_call_operand.vmem [shape: f32[2,1,1], index: 0, kind: input, shape index: {}]   ;;  %s182_s1 = inlined_call_operand.hbm [shape: f32[2,8,128], index: 1, kind: input, shape index: {}]   ;;  %s183_s2 = inlined_call_operand.hbm [shape: f32[2,8,128], index: 2, kind: output, shape index: {}]  }
   0x1   :  { %8 = vsyncpa [#allocation4], 0  ;;  %s125_s9 = smov [#allocation2]   ;;  %s77_s13 = scalar_lea.hbm %s182_s1, 256 }
   0x2   :  { %s16_s10 = sshll.u32 %s125_s9, 4  ;;  %p78_p0 = scmp.ne.s32.totalorder %s182_s1, %s77_s13  ;;  %s17_s10 = int_to_ptr.vmem [resolvable:$true] %s16_s10 }
   0x3   :  { %p81_p1 = scmp.lt.u32.totalorder %s77_s13, %s182_s1 }
   0x5   :  { %p83_p2 = pnand %p81_p1, %p78_p0 }
   0x7   :  { %86 = shalt.err (!%p83_p2)
}
   0x8   :  { %s87_s18 = scalar_lea.vmem %s17_s10, 256  ;;  %p92_p4 = scmp.lt.s32.totalorder %s17_s10, %s17_s10 }
   0x9   :  { %p88_p3 = scmp.ne.s32.totalorder %s17_s10, %s87_s18  ;;  %p93_p5 = scmp.lt.s32.totalorder %s87_s18, %s87_s18 }
   0xb   :  { %p94_p6 = por %p93_p5, %p92_p4 }
   0xd   :  { %p95_p7 = pnand %p94_p6, %p88_p3 }
   0xf   :  { %98 = shalt.err (!%p95_p7)
}
  0x10   :  { %s126_s19 = smov 128   ;;  %s127_s20 = smov 8  }
  0x11   :  { %22 = dma.hbm_to_vmem [thread:$0]  %s182_s1, 256, %s17_s10, [#allocation3], %s126_s19, %s126_s19, %s127_s20  }
  0x12   :  { %121 = dma.done.wait [#allocation3], 256  }
  0x13   :  { %122 = vsyncadd [#allocation3], 4294967040  ;;  %v128_v0 = vmov 0   ;;  %v69_v1 = vld [vmem:[%s181_s0] ss:$0 sm:$0xff]  ;;  %v27_v6 = vld [vmem:[#allocation2 + $0x8] sm:$0xff] }
  0x14   :  { %76 = vset.pattern.permute.xlu0 %v128_v0  ;;  %v70_v2 = vld [vmem:[%s181_s0 + $0x1] ss:$0 sm:$0xff]  ;;  %s129_s27 = smov [#allocation5]  }
  0x15   :  { %41 = vperm.xlu0 %76, %v69_v1   ;;  %v26_v3 = vld [vmem:[#allocation2] sm:$0xff]  ;;  %s57_s1 = sshll.u32 %s129_s27, 4  ;;  %s58_s1 = int_to_ptr.vmem [resolvable:$true] %s57_s1 }
  0x16   :  { %s99_s28 = scalar_lea.vmem %s58_s1, 256  ;;  %p104_p9 = scmp.lt.s32.totalorder %s58_s1, %s58_s1 }
  0x17   :  { %p100_p8 = scmp.ne.s32.totalorder %s58_s1, %s99_s28  ;;  %p105_p10 = scmp.lt.s32.totalorder %s99_s28, %s99_s28 }
  0x19   :  { %45 = vperm.xlu0 %76, %v70_v2   ;;  %p106_p11 = por %p105_p10, %p104_p9 }
  0x1b   :  { %p107_p12 = pnand %p106_p11, %p100_p8 }
  0x94   :  { %v42_v4 = vpop.permute.xlu0 %41 }
  0x95   :  { %v48_v5 = vmul.f32 %v42_v4, %v26_v3 }
  0x97   :  { %50 = vst [vmem:[#allocation5] sm:$0xff] %v48_v5 }
  0x98   :  { %v46_v7 = vpop.permute.xlu0 %45 }
  0x99   :  { %v49_v8 = vmul.f32 %v46_v7, %v27_v6 }
  0x9b   :  { %51 = vst [vmem:[#allocation5 + $0x8] sm:$0xff] %v49_v8 }
  0x9c   :  { %110 = shalt.err (!%p107_p12)
}
  0x9d   :  { %s111_s30 = scalar_lea.hbm %s183_s2, 256 }
  0x9e   :  { %p112_p13 = scmp.ne.s32.totalorder %s183_s2, %s111_s30  ;;  %p115_p0 = scmp.lt.u32.totalorder %s111_s30, %s183_s2 }
  0xa0   :  { %p117_p1 = pnand %p115_p0, %p112_p13 }
  0xa2   :  { %120 = shalt.err (!%p117_p1)
}
  0xa3   :  { %63 = dma.vmem_to_hbm [thread:$0]  %s58_s1, 256, %s183_s2, [#allocation4], %s126_s19, %s126_s19, %s127_s20  }
  0xa4   :  { %123 = dma.done.wait [#allocation4], 256  }
  0xa5   :  { %124 = vsyncadd [#allocation4], 4294967040 }
  0xa6   :  { %67 = vsyncpa [#allocation3], 1 }
  0xa7   :  { %68 = vsyncpa [#allocation4], 1 }

</bundles_post_ra>
